<compile_context>
chip_gen: v7x
topology: tpu7x:2x2x1
jax: 0.10.0
libtpu: 0.0.40
codegen_flags: <defaults>
</compile_context>

<pallas_src>
import jax
import jax.numpy as jnp
from jax.experimental import pallas as pl
from jax.experimental.pallas import tpu as pltpu

LN_EPS = 1e-5  # torch.nn.LayerNorm default


def _round_up(x, m):
    return (x + m - 1) // m * m


def _sublane_multiple(dtype):
    return {4: 8, 2: 16, 1: 32}.get(jnp.dtype(dtype).itemsize, 8)


def _vmem_capacity_bytes():
    try:
        return int(pltpu.get_tpu_info().vmem_capacity_bytes)
    except Exception:
        return 64 << 20  # conservative default: one v7x TensorCore


# -----------------------------------------------------------------------------
# Kernels
# -----------------------------------------------------------------------------

def _prenorm_kernel_1d(x_ref, w_ref, wb_ref, o_ref):
    """Folded weight fully resident in VMEM; 1-D grid over row tiles.

    LayerNorm stats in f32; normalized rows go straight from vregs into the
    MXU (weight dtype), f32 accumulation.  Weight block index is constant so
    Pallas DMAs W exactly once.
    """
    x = x_ref[...].astype(jnp.float32)
    mean = jnp.mean(x, axis=-1, keepdims=True)
    var = jnp.mean((x - mean) ** 2, axis=-1, keepdims=True)  # biased, like torch
    xn = ((x - mean) * jax.lax.rsqrt(var + LN_EPS)).astype(w_ref.dtype)
    out = jnp.dot(xn, w_ref[...], preferred_element_type=jnp.float32)
    o_ref[...] = (out + wb_ref[...].astype(jnp.float32)).astype(o_ref.dtype)


def _prenorm_kernel_2d(x_ref, w_ref, wb_ref, o_ref, xn_ref):
    """Weight too large for VMEM: 2-D grid (row tiles x output-feature tiles).

    Normalized rows are computed once per row tile (j == 0) into a VMEM
    scratch kept in the weight dtype and reused across all output-feature
    tiles.  INVARIANT: j must stay the innermost, sequentially executed
    ("arbitrary") grid axis on one core, otherwise j > 0 tiles would read a
    stale/other-core scratch.
    """
    j = pl.program_id(1)

    @pl.when(j == 0)
    def _():
        x = x_ref[...].astype(jnp.float32)
        mean = jnp.mean(x, axis=-1, keepdims=True)
        var = jnp.mean((x - mean) ** 2, axis=-1, keepdims=True)
        xn_ref[...] = ((x - mean) * jax.lax.rsqrt(var + LN_EPS)).astype(xn_ref.dtype)

    out = jnp.dot(xn_ref[...], w_ref[...], preferred_element_type=jnp.float32)
    o_ref[...] = (out + wb_ref[...].astype(jnp.float32)).astype(o_ref.dtype)


# -----------------------------------------------------------------------------
# Wrapper
# -----------------------------------------------------------------------------

def prenorm_linear(x, gamma, beta, w, wb, *, tile_m=512, tile_n=2048,
                   compute_dtype=None, vmem_budget_bytes=None):
    """PreNorm(dim, Linear): fn(LayerNorm(x)).

    x: (B, N, D); gamma/beta: (D,); w: (D, D_out); wb: (D_out,).
    compute_dtype: dtype fed to the MXU (defaults to w.dtype; pass
      jnp.bfloat16 for the fast MXU path while keeping f32 accumulation).
    """
    B, N, D = x.shape
    D_out = w.shape[1]
    M = B * N
    out_dtype = x.dtype

    cd = jnp.dtype(compute_dtype) if compute_dtype is not None else jnp.dtype(w.dtype)
    x_it = jnp.dtype(x.dtype).itemsize
    cd_it = cd.itemsize
    o_it = jnp.dtype(out_dtype).itemsize

    # Fold the LayerNorm affine into the Linear (one-time f32 transform):
    #   (xn * gamma + beta) @ W + wb == xn @ (gamma[:, None] * W) + (beta @ W + wb)
    w_f32 = w.astype(jnp.float32)
    w_fold = (gamma.astype(jnp.float32)[:, None] * w_f32).astype(cd)
    wb_fold = beta.astype(jnp.float32) @ w_f32 + wb.astype(jnp.float32)

    # --- Tile sizing ---------------------------------------------------------
    sub = _sublane_multiple(x.dtype)          # 8 (f32) / 16 (bf16) / 32 (i8)
    tile_m = max(sub, _round_up(min(tile_m, _round_up(M, sub)), sub))
    if M <= tile_m:
        # Small M: still aim for >=2 row blocks so both v7x TensorCores work.
        n_blocks = 2 if M > sub else 1
        tile_m = _round_up(pl.cdiv(M, n_blocks), sub)
    else:
        # Balanced row tiles: avoid a nearly-empty last tile.
        n_blocks = pl.cdiv(M, tile_m)
        tile_m = _round_up(pl.cdiv(M, n_blocks), sub)
    M_pad = _round_up(M, tile_m)

    D_out_pad = _round_up(D_out, 128)         # lane-dense, unmasked stores

    phys_vmem = _vmem_capacity_bytes()
    budget = (vmem_budget_bytes if vmem_budget_bytes is not None
              else int(phys_vmem * 0.75))

    w_bytes_full = D * D_out_pad * cd_it

    def footprint_1d(tm):
        return (2 * tm * D * x_it              # x row tile (double-buffered)
                + 2 * w_bytes_full             # folded weight (resident)
                + 2 * D_out_pad * 4            # folded bias
                + 2 * tm * D_out_pad * o_it)   # output tile

    def footprint_2d(tm, tn):
        return (2 * tm * D * x_it
                + 3 * D * tn * cd_it           # weight block (Buffered depth 3)
                + 2 * tn * 4
                + 2 * tm * tn * o_it
                + tm * D * cd_it)              # xn scratch (weight dtype)

    use_1d = footprint_1d(tile_m) <= budget

    if use_1d:
        footprint = footprint_1d(tile_m)
    else:
        tile_n = min(max(128, _round_up(tile_n, 128)), D_out_pad)
        while footprint_2d(tile_m, tile_n) > budget:
            if tile_n > 128:
                tile_n = max(128, _round_up(tile_n // 2, 128))
            elif tile_m > sub:
                tile_m = max(sub, _round_up(tile_m // 2, sub))
                M_pad = _round_up(M, tile_m)
            else:
                break  # smallest sensible tiles; proceed anyway
        footprint = footprint_2d(tile_m, tile_n)
        D_out_pad = _round_up(D_out_pad, tile_n)
        n_j = D_out_pad // tile_n
        w_buf_depth = min(3, max(2, n_j))

    # --- Padding -------------------------------------------------------------
    xf = x.reshape(M, D)
    if M_pad != M:
        # Padded rows normalize to exactly 0 and are sliced off below.
        xf = jnp.pad(xf, ((0, M_pad - M), (0, 0)))
    if D_out_pad != D_out:
        w_fold = jnp.pad(w_fold, ((0, 0), (0, D_out_pad - D_out)))
        wb_fold = jnp.pad(wb_fold, ((0, D_out_pad - D_out),))
    wb2 = wb_fold.reshape(1, D_out_pad)

    # VMEM limit from the actual tile footprint (plus headroom), capped below
    # the physical capacity of the chip generation we are running on.
    vmem_limit = int(min(int(phys_vmem * 0.9),
                         max(footprint + (8 << 20), 16 << 20)))

    if use_1d:
        grid = (M_pad // tile_m,)
        grid_spec = pltpu.PrefetchScalarGridSpec(
            num_scalar_prefetch=0,
            grid=grid,
            in_specs=[
                pl.BlockSpec((tile_m, D), lambda i: (i, 0)),        # x row tile
                pl.BlockSpec((D, D_out_pad), lambda i: (0, 0)),     # W (DMA'd once)
                pl.BlockSpec((1, D_out_pad), lambda i: (0, 0)),     # folded bias
            ],
            out_specs=pl.BlockSpec((tile_m, D_out_pad), lambda i: (i, 0)),
        )
        kernel = _prenorm_kernel_1d
        dim_sem = ("parallel",)
        w_reads = 1
    else:
        grid = (M_pad // tile_m, D_out_pad // tile_n)
        grid_spec = pltpu.PrefetchScalarGridSpec(
            num_scalar_prefetch=0,
            grid=grid,
            in_specs=[
                pl.BlockSpec((tile_m, D), lambda i, j: (i, 0)),     # x row tile
                pl.BlockSpec((D, tile_n), lambda i, j: (0, j),      # W tile
                             pipeline_mode=pl.Buffered(w_buf_depth)),
                pl.BlockSpec((1, tile_n), lambda i, j: (0, j)),     # bias tile
            ],
            out_specs=pl.BlockSpec((tile_m, tile_n), lambda i, j: (i, j)),
            scratch_shapes=[pltpu.VMEM((tile_m, D), cd)],           # normalized rows
        )
        kernel = _prenorm_kernel_2d
        # j must stay "arbitrary": the xn scratch computed at j == 0 is reused
        # across all j tiles of the same row block on the same core.
        dim_sem = ("parallel", "arbitrary")
        w_reads = grid[0]

    flops = 2 * M_pad * D * D_out_pad
    bytes_accessed = (
        M_pad * D * x_it
        + w_reads * D * D_out_pad * cd_it
        + D_out_pad * 4
        + M_pad * D_out_pad * o_it)

    out = pl.pallas_call(
        kernel,
        out_shape=jax.ShapeDtypeStruct((M_pad, D_out_pad), out_dtype),
        grid_spec=grid_spec,
        compiler_params=pltpu.CompilerParams(
            dimension_semantics=dim_sem,
            vmem_limit_bytes=vmem_limit,
        ),
        cost_estimate=pl.CostEstimate(
            flops=flops, transcendentals=M_pad, bytes_accessed=bytes_accessed),
    )(xf, w_fold, wb2)

    return out[:M, :D_out].reshape(B, N, D_out)


def prenorm_linear_ref(x, gamma, beta, w, wb):
    xf = x.astype(jnp.float32)
    mean = jnp.mean(xf, axis=-1, keepdims=True)
    var = jnp.mean((xf - mean) ** 2, axis=-1, keepdims=True)
    y = (xf - mean) * jax.lax.rsqrt(var + LN_EPS) * gamma + beta
    return (y @ w.astype(jnp.float32) + wb).astype(x.dtype)


if __name__ == "__main__":
    key = jax.random.PRNGKey(0)

    # --- Test 1: PreNorm(dim=32, Linear(32, 32)), f32, resident-weight 1-D path
    B, N, D, D_out = 2, 8, 32, 32
    kx, kg, kb, kw, kwb = jax.random.split(key, 5)
    x = jax.random.normal(kx, (B, N, D), dtype=jnp.float32)
    gamma = 1.0 + 0.1 * jax.random.normal(kg, (D,), dtype=jnp.float32)
    beta = 0.1 * jax.random.normal(kb, (D,), dtype=jnp.float32)
    w = jax.random.normal(kw, (D, D_out), dtype=jnp.float32) * 0.05
    wb = jax.random.normal(kwb, (D_out,), dtype=jnp.float32) * 0.01

    out = jax.block_until_ready(prenorm_linear(x, gamma, beta, w, wb))
    ref = prenorm_linear_ref(x, gamma, beta, w, wb)
    assert out.shape == (B, N, D_out)
    assert jnp.allclose(out, ref, atol=1e-4, rtol=1e-4)

    # --- Test 2: force the 2-D (tiled-weight) fallback via a tiny VMEM budget
    B2, N2, D2, D_out2 = 2, 32, 128, 512
    k2 = jax.random.split(key, 6)
    x2 = jax.random.normal(k2[0], (B2, N2, D2), dtype=jnp.float32)
    g2 = 1.0 + 0.1 * jax.random.normal(k2[1], (D2,), dtype=jnp.float32)
    b2 = 0.1 * jax.random.normal(k2[2], (D2,), dtype=jnp.float32)
    w2 = jax.random.normal(k2[3], (D2, D_out2), dtype=jnp.float32) * 0.05
    wb_2 = jax.random.normal(k2[4], (D_out2,), dtype=jnp.float32) * 0.01

    out2 = jax.block_until_ready(
        prenorm_linear(x2, g2, b2, w2, wb_2, vmem_budget_bytes=512 * 1024))
    ref2 = prenorm_linear_ref(x2, g2, b2, w2, wb_2)
    assert out2.shape == (B2, N2, D_out2)
    assert jnp.allclose(out2, ref2, atol=1e-4, rtol=1e-4)

    # --- Test 3: bf16 MXU feed (f32 accumulation), looser tolerance
    out3 = jax.block_until_ready(
        prenorm_linear(x, gamma, beta, w, wb, compute_dtype=jnp.bfloat16))
    assert jnp.allclose(out3, ref, atol=3e-2, rtol=3e-2)

    # TODO(synk): PreNorm's `fn` is an arbitrary constructor-supplied module
    # (and forwards **kwargs); only the Linear(dim, dim_out) instantiation is
    # fused here.
    print("KERNEL_OK")
</pallas_src>

<mosaic_0001>
module attributes {stable_mosaic.version = 11 : i64} {
  func.func @_prenorm_kernel_1d(%arg0: i32, %arg1: memref<8x32xf32, #tpu.memory_space<vmem>>, %arg2: memref<32x128xf32, #tpu.memory_space<vmem>>, %arg3: memref<1x128xf32, #tpu.memory_space<vmem>>, %arg4: memref<8x128xf32, #tpu.memory_space<vmem>>) attributes {dimension_semantics = [#tpu.dimension_semantics<parallel>], iteration_bounds = array<i64: 2>, scalar_prefetch = 0 : i64, scratch_operands = 0 : i64, tpu.core_type = #tpu.core_type<tc>, window_params = [{transform_indices = @transform_0, window_bounds = array<i64: 8, 32>}, {pipeline_mode = #tpu.pipeline_mode<synchronous>, transform_indices = @transform_1, window_bounds = array<i64: 32, 128>}, {pipeline_mode = #tpu.pipeline_mode<synchronous>, transform_indices = @transform_2, window_bounds = array<i64: 1, 128>}, {transform_indices = @transform_3, window_bounds = array<i64: 8, 128>}]} {
    %c0 = arith.constant 0 : index
    %c0_0 = arith.constant 0 : index
    %0 = vector.load %arg1[%c0, %c0_0] : memref<8x32xf32, #tpu.memory_space<vmem>>, vector<8x32xf32>
    %cst = arith.constant dense<0.000000e+00> : vector<8xf32>
    %1 = vector.multi_reduction <add>, %0, %cst [1] : vector<8x32xf32> to vector<8xf32>
    %2 = vector.shape_cast %1 : vector<8xf32> to vector<8x1xf32>
    %cst_1 = arith.constant 3.200000e+01 : f32
    %3 = vector.broadcast %cst_1 : f32 to vector<8x1xf32>
    %4 = arith.divf %2, %3 : vector<8x1xf32>
    %5 = vector.broadcast %4 : vector<8x1xf32> to vector<8x32xf32>
    %6 = arith.subf %0, %5 : vector<8x32xf32>
    %7 = arith.mulf %6, %6 : vector<8x32xf32>
    %cst_2 = arith.constant dense<0.000000e+00> : vector<8xf32>
    %8 = vector.multi_reduction <add>, %7, %cst_2 [1] : vector<8x32xf32> to vector<8xf32>
    %9 = vector.shape_cast %8 : vector<8xf32> to vector<8x1xf32>
    %cst_3 = arith.constant 3.200000e+01 : f32
    %10 = vector.broadcast %cst_3 : f32 to vector<8x1xf32>
    %11 = arith.divf %9, %10 : vector<8x1xf32>
    %12 = vector.broadcast %4 : vector<8x1xf32> to vector<8x32xf32>
    %13 = arith.subf %0, %12 : vector<8x32xf32>
    %cst_4 = arith.constant 9.99999974E-6 : f32
    %14 = vector.broadcast %cst_4 : f32 to vector<8x1xf32>
    %15 = arith.addf %11, %14 : vector<8x1xf32>
    %16 = math.rsqrt %15 : vector<8x1xf32>
    %17 = vector.broadcast %16 : vector<8x1xf32> to vector<8x32xf32>
    %18 = arith.mulf %13, %17 : vector<8x32xf32>
    %c0_5 = arith.constant 0 : index
    %c0_6 = arith.constant 0 : index
    %19 = vector.load %arg2[%c0_5, %c0_6] : memref<32x128xf32, #tpu.memory_space<vmem>>, vector<32x128xf32>
    %cst_7 = arith.constant dense<0.000000e+00> : vector<8x128xf32>
    %20 = tpu.matmul %18, %19, %cst_7 {dimension_numbers = #tpu.dot_dimension_numbers<[1], [0], [0], [1], [0, 0, 1, 1], [], []>} : vector<8x32xf32>, vector<32x128xf32>, vector<8x128xf32> -> vector<8x128xf32>
    %c0_8 = arith.constant 0 : index
    %c0_9 = arith.constant 0 : index
    %21 = vector.load %arg3[%c0_8, %c0_9] : memref<1x128xf32, #tpu.memory_space<vmem>>, vector<1x128xf32>
    %22 = vector.broadcast %21 : vector<1x128xf32> to vector<8x128xf32>
    %23 = arith.addf %20, %22 : vector<8x128xf32>
    %c0_10 = arith.constant 0 : index
    %c0_11 = arith.constant 0 : index
    %24 = vector.load %arg4[%c0_10, %c0_11] : memref<8x128xf32, #tpu.memory_space<vmem>>, vector<8x128xf32>
    tpu.vector_store %arg4[%c0_10, %c0_11], %23 {strides = array<i32>} : memref<8x128xf32, #tpu.memory_space<vmem>>, vector<8x128xf32>,
    return
  }
  func.func @transform_0(%arg0: i32) -> (i32, i32) {
    %c0_i32 = arith.constant 0 : i32
    %c0_i32_0 = arith.constant 0 : i32
    return %arg0, %c0_i32 : i32, i32
  }
  func.func @transform_1(%arg0: i32) -> (i32, i32) {
    %c0_i32 = arith.constant 0 : i32
    %c0_i32_0 = arith.constant 0 : i32
    %c0_i32_1 = arith.constant 0 : i32
    return %c0_i32, %c0_i32_0 : i32, i32
  }
  func.func @transform_2(%arg0: i32) -> (i32, i32) {
    %c0_i32 = arith.constant 0 : i32
    %c0_i32_0 = arith.constant 0 : i32
    %c0_i32_1 = arith.constant 0 : i32
    return %c0_i32, %c0_i32_0 : i32, i32
  }
  func.func @transform_3(%arg0: i32) -> (i32, i32) {
    %c0_i32 = arith.constant 0 : i32
    %c0_i32_0 = arith.constant 0 : i32
    return %arg0, %c0_i32 : i32, i32
  }
}

</mosaic_0001>

<bundles_post_ra>
// kernel: tpu_custom_call.1
= control target key start
LH: loop header
LB: loop body
LE: loop exit
PB: predicated region body
PF: predicated region fallthrough
CT: control target
= control target key end

     0   :  { %8 = vsyncpa [#allocation3], 0  ;;  %s862_s0 = inlined_call_operand.hbm [shape: f32[16,32], index: 0, kind: input, shape index: {}]   ;;  %s863_s1 = inlined_call_operand.hbm [shape: f32[32,128], index: 1, kind: input, shape index: {}]   ;;  %s864_s2 = inlined_call_operand.vmem [shape: f32[1,128], index: 2, kind: input, shape index: {}]   ;;  %s865_s3 = inlined_call_operand.hbm [shape: f32[16,128], index: 3, kind: output, shape index: {}]  }
   0x1   :  { %10 = vsyncpa [#allocation3 + $0x1], 0 }
   0x2   :  { %11 = vsyncpa [#allocation6], 0 }
   0x3   :  { %12 = vsyncpa [#allocation4], 0 }
   0x4   :  { %14 = vsyncpa [#allocation4 + $0x1], 0  ;;  %s656_s12 = smov 0   ;;  %s658_s13 = smov 0  }
   0x5   :  { %s660_s14 = smov 0   ;;  %s662_s15 = smov 0  }
   0x6 LB: > { %s677_s16 = sadd.s32 4294967295, %s626_s15   ;;  %s396_s17 = sadd.s32 4294967294, %s626_s15   ;;  %s626_s15 = sphi %s662_s15, %s885_s15   ;;  %s622_s14 = sphi %s660_s14, %s884_s14   ;;  %s618_s13 = sphi %s658_s13, %s883_s13   ;;  %s614_s12 = sphi %s656_s12, %s882_s12  }
   0x7   : > { %p40_p0 = scmp.ne.s32.totalorder %s618_s13, %s614_s12  ;;  %p866_p1 = scmp.eq.s32.totalorder %s677_s16, 0 }
   0x8   : > { %p112_p3 = scmp.eq.s32.totalorder %s396_s17, 1  ;;  %p397_p5 = scmp.ge.s32.totalorder %s626_s15, 1 }
   0x9   : > { %p686_p4 = por %p866_p1, %p40_p0  ;;  %p119_p7 = scmp.lt.s32.totalorder %s626_s15, 3 }
   0xa   : > { %p691_p6 = por %p112_p3, %p40_p0  ;;  %s628_s21 = smov [#allocation5]  }
   0xb   : > { %s869_s18 = scalar_select %p686_p4, 1, 0 }
   0xc   : > { %s870_s19 = scalar_select %p691_p6, 1, 0 }
   0xd   : > { %p696_p8 = pnand %p397_p5, %p119_p7  ;;  %s131_s22 = sshll.u32 %s628_s21, 4  ;;  %s700_s22 = int_to_ptr.vmem [resolvable:$true] %s131_s22 }
   0xe   : > { %s712_s24 = sadd.s32 1, %s626_s15   ;;  %s27_s25 = sadd.s32 1, %s622_s14 }
   0xf   : > { %s871_s20 = scalar_select %p696_p8, 1, 0 }
  0x10   : > { %p442_p9 = pneg %p696_p8  ;;  %s24_s26 = ssub.s32 %s626_s15, %s712_s24 }
  0x11   : > { %s498_s29 = scalar_lea.hbm %s863_s1, 512 }
  0x12   : > { %p707_p11 = pnand %p442_p9, %p866_p1  ;;  %p499_p12 = scmp.ne.s32.totalorder %s863_s1, %s498_s29 }
  0x13   : > { %p505_p5 = scmp.lt.u32.totalorder %s498_s29, %s863_s1 }
  0x14   : > { %p500_p13 = pneg %p707_p11 }
  0x16   : > { %p501_p0 = pnand %p500_p13, %p499_p12 }
  0x18   : > { %p502_p3 = pneg %p501_p0 }
  0x1a   : > { %p507_p7 = pnand %p505_p5, %p502_p3 }
  0x1c   : > { %510 = shalt.err (!%p507_p7)
}
  0x1d   : > { %s511_s7 = scalar_lea.vmem %s700_s22, 512  ;;  %p519_p2 = scmp.lt.s32.totalorder %s700_s22, %s700_s22 }
  0x1e   : > { %p512_p9 = scmp.ne.s32.totalorder %s700_s22, %s511_s7  ;;  %p520_p6 = scmp.lt.s32.totalorder %s511_s7, %s511_s7 }
  0x20   : > { %p514_p10 = pnand %p512_p9, %p500_p13  ;;  %p521_p4 = por %p520_p6, %p519_p2 }
  0x22   : > { %p515_p1 = pneg %p514_p10 }
  0x24   : > { %p522_p8 = pnand %p521_p4, %p515_p1 }
  0x26   : > { %525 = shalt.err (!%p522_p8)
}
  0x27   : > { %s629_s8 = smov 128   ;;  %s630_s9 = smov 8  }
  0x28   : > { %445 = dma.hbm_to_vmem [thread:$0]  (!%p707_p11), %s863_s1, 512, %s700_s22, [#allocation6], %s629_s8, %s629_s8, %s630_s9  }
  0x29   : > { %p25_p2 = scmp.eq.s32.totalorder %s24_s26, 0  ;;  %p34_p1 = scmp.ne.s32.totalorder %s622_s14, %s618_s13 }
  0x2a   : > { %p35_p4 = scmp.eq.s32.totalorder %s626_s15, 0  ;;  %p455_p6 = scmp.lt.s32.totalorder %s626_s15, 2 }
  0x2b   : > { %s743_s17 = scalar_select %p25_p2, %s622_s14, %s27_s25  }
  0x2c   : > { %p36_p8 = por %p35_p4, %p34_p1  ;;  %p873_p10 = scmp.eq.s32.totalorder %s677_s16, 1 }
  0x2d   : > { %s148_s27 = sand.u32 1, %s622_s14   ;;  %s401_s28 = sshll.u32 %s626_s15, 7 }
  0x2e   : > { %p747_p12 = por %p873_p10, %p34_p1  ;;  %s400_s29 = sshll.u32 %s148_s27, 3 }
  0x2f   : > { %s756_s4 = scalar_lea.hbm %s862_s0, %s401_s28  ;;  %s152_s22 = scalar_lea.vmem [#allocation2], %s400_s29 }
  0x30   : > { %s159_s25 = sshll.u32 %s152_s22, 4  ;;  %p758_p11 = pnand %p455_p6, %p36_p8  ;;  %s762_s25 = int_to_ptr.vmem [resolvable:$true] %s159_s25 }
  0x31   : > { %s149_s5 = scalar_lea.sflag [#allocation3], %s148_s27  ;;  %s526_s6 = scalar_lea.hbm %s756_s4, 128 }
  0x32   : > { %p527_p13 = scmp.ne.s32.totalorder %s756_s4, %s526_s6  ;;  %p528_p0 = pneg %p758_p11 }
  0x33   : > { %s531_s9 = scalar_lea.hbm %s862_s0, 256  ;;  %p532_p7 = scmp.lt.u32.totalorder %s756_s4, %s862_s0 }
  0x34   : > { %p529_p3 = pnand %p528_p0, %p527_p13  ;;  %p533_p9 = scmp.lt.u32.totalorder %s531_s9, %s526_s6 }
  0x35   : > { %p535_p1 = scmp.lt.u32.totalorder %s526_s6, %s756_s4 }
  0x36   : > { %p530_p5 = pneg %p529_p3  ;;  %p534_p2 = por %p533_p9, %p532_p7 }
  0x38   : > { %p536_p4 = por %p535_p1, %p534_p2 }
  0x3a   : > { %p537_p6 = pnand %p536_p4, %p530_p5 }
  0x3c   : > { %540 = shalt.err (!%p537_p6)
}
  0x3d   : > { %s541_s27 = scalar_lea.vmem %s762_s25, 128  ;;  %s631_s28 = smov [#allocation2]  }
  0x3e   : > { %p542_p8 = scmp.ne.s32.totalorder %s762_s25, %s541_s27  ;;  %s546_s29 = sshll.u32 %s631_s28, 4  ;;  %s547_s29 = int_to_ptr.vmem [resolvable:$false] %s546_s29 }
  0x3f   : > { %s548_s23 = scalar_lea.vmem %s547_s29, 256  ;;  %p549_p3 = scmp.lt.s32.totalorder %s762_s25, %s547_s29 }
  0x40   : > { %p544_p10 = pnand %p542_p8, %p528_p0  ;;  %p550_p7 = scmp.lt.s32.totalorder %s548_s23, %s541_s27 }
  0x42   : > { %p545_p13 = pneg %p544_p10  ;;  %p551_p9 = por %p550_p7, %p549_p3 }
  0x44   : > { %p552_p2 = pnand %p551_p9, %p545_p13 }
  0x46   : > { %555 = shalt.err (!%p552_p2)
}
  0x47   : > { %449 = dma.hbm_to_vmem [thread:$0]  (!%p758_p11), %s756_s4, 128, %s762_s25, %s149_s5  }
  0x48   : > { %p876_p5 = scmp.ne.s32.totalorder %s871_s20, 0 }
  0x49   : > { %s792_s30 = sand.u32 (!%p876_p5), 1, %s618_s13   ;;  %p877_p0 = scmp.ne.s32.totalorder (!%p876_p5), %s869_s18, 0 }
  0x4a   : > { %168 = sbr.rel (%p876_p5) target bundleno = 623 (0x26f), region = 32  ;;  %s403_s22 = sshll.u32 (!%p876_p5), %s792_s30, 3 }
  0x4b   : > { %s171_s6 = scalar_lea.sflag (!%p876_p5), [#allocation3], %s792_s30  ;;  %s174_s7 = scalar_lea.vmem (!%p876_p5), [#allocation2], %s403_s22 }
  0x51   : > { %601 = dma.done.wait (%p877_p0), %s171_s6, 128  }
  0x52   : > { %603 = vsyncadd (%p877_p0), %s171_s6, 4294967168  ;;  %p878_p11 = scmp.eq.s32.totalorder %s677_s16, 0 }
  0x54   : > { %605 = dma.done.wait (%p878_p11), [#allocation6], 512   ;;  %p879_p1 = pmov %p878_p11 }
  0x55   : > { %vm202_vm0 = vcmask 261120   ;;  %v201_v0 = vld [vmem:[%s174_s7] sm:$0xff]  ;;  %v217_v7 = vld [vmem:[#allocation5] sm:$0xff]  ;;  %v218_v8 = vld [vmem:[#allocation5 + $0x8] sm:$0xff]  ;;  %v632_v10 = vmov 0.0|0.0   ;;  %vm633_vm1 = vmmov 0  }
  0x56   : > { %607 = vsyncadd (%p879_p1), [#allocation6], 4294966784  ;;  %v203_v1 = vsel %vm202_vm0, %v201_v0, 0.0  ;;  %v219_v9 = vld [vmem:[#allocation5 + $0x10] sm:$0xff]  ;;  %428 = vmatprep.subr.bf16.mxu0 %v632_v10  ;;  %v429_v11 = vpack.c.bf16 %v218_v8, %v217_v7  ;;  %v220_v12 = vld [vmem:[#allocation5 + $0x18] sm:$0xff]  ;;  %v634_v13 = vmov 0.0  }
  0x57   : > { %204 = vadd.xlane.f32.xlu0 %v203_v1  ;;  %425 = vmatprep.mubr.msk.f32.mxu0 %vm633_vm1, %v634_v13  ;;  %v432_v14 = vpack.c.bf16 %v220_v12, %v219_v9  ;;  %v406_v20 = vld [vmem:[%s864_s2] ss:$0 sm:$0xff]  ;;  %s409_s4 = sshll.u32 %s677_s16, 7  ;;  %s200_s25 = scalar_lea.vmem [#allocation7], %s403_s22 }
  0x58   : > { %430 = vmatpush3.bf16.msra.mxu0 %v429_v11  ;;  %s316_s26 = sshll.u32 %s200_s25, 4  ;;  %s818_s9 = scalar_lea.hbm %s865_s3, %s409_s4  ;;  %s820_s26 = int_to_ptr.vmem [resolvable:$true] %s316_s26 }
  0x59   : > { %431 = vmatprep.subr.bf16.mxu0 %v632_v10  ;;  %s303_s10 = scalar_lea.sflag [#allocation4], %s792_s30  ;;  %s556_s11 = scalar_lea.vmem %s820_s26, 128 }
  0x5a   : > { %p557_p4 = scmp.ne.s32.totalorder %s820_s26, %s556_s11  ;;  %s635_s16 = smov [#allocation7]  }
  0x5b   : > { %s560_s27 = sshll.u32 %s635_s16, 4  ;;  %s561_s27 = int_to_ptr.vmem [resolvable:$false] %s560_s27 }
  0x5c   : > { %433 = vmatpush3.bf16.msra.mxu0 %v432_v14  ;;  %p558_p6 = pnand %p557_p4, %p747_p12  ;;  %s562_s28 = scalar_lea.vmem %s561_s27, 256 }
  0x5d   : > { %p563_p10 = scmp.lt.s32.totalorder %s820_s26, %s561_s27  ;;  %p564_p13 = scmp.lt.s32.totalorder %s562_s28, %s556_s11 }
  0x5e   : > { %p559_p8 = pneg %p558_p6 }
  0x5f   : > { %p565_p3 = por %p564_p13, %p563_p10 }
  0x61   : > { %p566_p7 = pnand %p565_p3, %p559_p8 }
  0xe4   : > { %v205_v2 = vpop.xlane.xlu0 %204 }
  0xe5   : > { %v207_v3 = vmul.f32 0.03125, %v205_v2 }
  0xe7   : > { %v208_v4 = vsub.f32 %v201_v0, %v207_v3 }
  0xe9   : > { %v209_v5 = vmul.f32 %v208_v4, %v208_v4 }
  0xeb   : > { %v210_v6 = vsel %vm202_vm0, %v209_v5, 0.0 }
  0xec   : > { %211 = vadd.xlane.f32.xlu0 %v210_v6 }
 0x179   : > { %v212_v15 = vpop.xlane.xlu0 %211 }
 0x17a   : > { %v213_v16 = vmul.f32 0.03125, %v212_v15 }
 0x17c   : > { %v214_v17 = vadd.f32 1e-05, %v213_v16 }
 0x17e   : > { %496 = vrsqrt.f32 %v214_v17 }
 0x188   : > { %v497_v18 = vpop.eup %496 }
 0x189   : > { %v216_v19 = vmul.f32 %v497_v18, %v208_v4 }
 0x18b   : > { %426 = vmatmul.mubr.msk.f32.vlgmr.msra.gmra.mrb[0].mxu0 %vm202_vm0, %v216_v19 }
 0x25e   : > { %v297_v21 = vpop.f32.mrb[0].mxu0 }
 0x25f   : > { %v298_v22 = vadd.f32 %v406_v20, %v297_v21  ;;  %v427_v23 = vpop.f32.mrb[1].mxu0 }
 0x261   : > { %301 = vst [vmem:[%s200_s25] sm:$0xff] %v298_v22 }
 0x262   : > { %569 = shalt.err (!%p566_p7)
}
 0x263   : > { %s570_s29 = scalar_lea.hbm %s818_s9, 128  ;;  %s574_s22 = scalar_lea.hbm %s865_s3, 256 }
 0x264   : > { %p571_p9 = scmp.ne.s32.totalorder %s818_s9, %s570_s29  ;;  %p575_p0 = scmp.lt.u32.totalorder %s818_s9, %s865_s3 }
 0x265   : > { %p576_p11 = scmp.lt.u32.totalorder %s574_s22, %s570_s29  ;;  %p578_p4 = scmp.lt.u32.totalorder %s570_s29, %s818_s9 }
 0x266   : > { %p572_p2 = pnand %p571_p9, %p747_p12 }
 0x267   : > { %p577_p1 = por %p576_p11, %p575_p0 }
 0x268   : > { %p573_p5 = pneg %p572_p2 }
 0x269   : > { %p579_p6 = por %p578_p4, %p577_p1 }
 0x26b   : > { %p580_p8 = pnand %p579_p6, %p573_p5 }
 0x26d   : > { %583 = shalt.err (!%p580_p8)
}
 0x26e   : > { %440 = dma.vmem_to_hbm [thread:$0]  (%p747_p12), %s820_s26, 128, %s818_s9, %s303_s10  }
 0x26f PF: > { %s328_s18 = sand.u32 1, %s614_s12   ;;  %p880_p10 = scmp.ne.s32.totalorder %s870_s19, 0 }
 0x270   : > { %p881_p13 = scmp.ge.s32.totalorder %s626_s15, 2  ;;  %s329_s20 = scalar_lea.sflag [#allocation4], %s328_s18 }
 0x272   : > { %p451_p3 = pnand %p881_p13, %p880_p10 }
 0x274   : > { %609 = dma.done.wait (!%p451_p3), %s329_s20, 128  }
 0x275   : > { %611 = vsyncadd (!%p451_p3), %s329_s20, 4294967168  ;;  %p17_p7 = scmp.ge.s32.totalorder %s712_s24, 4   ;;  %s882_s12 = smov %s618_s13 }
 0x276   : > { %s883_s13 = smov %s622_s14  ;;  %s884_s14 = smov %s743_s17 }
 0x277   : > { %s885_s15 = smov %s712_s24  ;;  %19 = sbr.rel (!%p17_p7) target bundleno = 6 (0x6), region = 81 }
 0x27e   :  { %334 = vsyncpa [#allocation3], 1 }
 0x27f   :  { %336 = vsyncpa [#allocation3 + $0x1], 1 }
 0x280   :  { %337 = vsyncpa [#allocation6], 1 }
 0x281   :  { %338 = vsyncpa [#allocation4], 1 }
 0x282   :  { %340 = vsyncpa [#allocation4 + $0x1], 1 }

</bundles_post_ra>
